<compile_context>
chip_gen: v5e
topology: v5e:2x2
jax: 0.10.0
libtpu: 0.0.40
codegen_flags: <defaults>
</compile_context>

<pallas_src>
import jax
import jax.numpy as jnp
from jax.experimental import pallas as pl
from jax.experimental.pallas import tpu as pltpu

EPS = 1e-5


def encoder_kernel(x_ref, w_ref, p_ref, o_ref):
    # x: (N, D), w: (D, E), p: (2, E) = [gamma; beta], o: (N, E)
    y = jnp.dot(x_ref[...], w_ref[...], preferred_element_type=jnp.float32)

    # BatchNorm1d, training mode: statistics over the batch dim, biased variance.
    # (Linear bias omitted on purpose — it cancels against the batch-mean subtraction.)
    mean = jnp.mean(y, axis=0, keepdims=True)
    diff = y - mean
    var = jnp.mean(diff * diff, axis=0, keepdims=True)

    gamma = p_ref[0:1, :]
    beta = p_ref[1:2, :]
    y = diff * jax.lax.rsqrt(var + EPS) * gamma + beta

    # ReLU
    o_ref[...] = jnp.maximum(y, 0.0)


def encoder_forward(x, w, gamma, beta):
    """Forward pass of Encoder: relu(batchnorm1d(linear(x))), training-mode BN.

    The Linear bias is intentionally not an argument: with training-mode BatchNorm
    directly after the Linear, a constant per-feature bias has no effect on the output.
    """
    n, _ = x.shape
    e = w.shape[1]
    params = jnp.stack([gamma, beta], axis=0)  # (2, E) — single packed small operand
    vmem = pl.BlockSpec(memory_space=pltpu.MemorySpace.VMEM)
    return pl.pallas_call(
        encoder_kernel,
        out_shape=jax.ShapeDtypeStruct((n, e), jnp.float32),
        in_specs=[vmem, vmem, vmem],
        out_specs=vmem,
    )(x, w, params)


if __name__ == "__main__":
    INPUT_DIM = 32   # input_dim
    EMB = 16         # emb
    N = 8            # batch

    key = jax.random.PRNGKey(0)
    kx, kw, kb, kg, kbeta = jax.random.split(key, 5)

    # nn.Linear-style uniform(-1/sqrt(fan_in), 1/sqrt(fan_in)) init (deterministic).
    bound = 1.0 / jnp.sqrt(jnp.float32(INPUT_DIM))
    w = jax.random.uniform(kw, (INPUT_DIM, EMB), jnp.float32, -bound, bound)
    b = jax.random.uniform(kb, (EMB,), jnp.float32, -bound, bound)  # used only by reference
    # Non-trivial BN affine params to exercise the scale/shift path.
    gamma = 1.0 + 0.1 * jax.random.normal(kg, (EMB,), jnp.float32)
    beta = 0.1 * jax.random.normal(kbeta, (EMB,), jnp.float32)

    x = jax.random.normal(kx, (N, INPUT_DIM), jnp.float32)

    out = encoder_forward(x, w, gamma, beta)
    out = jax.block_until_ready(out)

    # Pure-JAX reference (includes the Linear bias — it must cancel through BN).
    y_ref = x @ w + b
    mean = jnp.mean(y_ref, axis=0, keepdims=True)
    var = jnp.mean((y_ref - mean) ** 2, axis=0, keepdims=True)
    y_ref = (y_ref - mean) / jnp.sqrt(var + EPS) * gamma + beta
    ref = jnp.maximum(y_ref, 0.0)

    assert out.shape == (N, EMB)
    assert jnp.allclose(out, ref, atol=1e-5, rtol=1e-5), "mismatch vs reference"

    print("KERNEL_OK")
</pallas_src>

<mosaic_0001>
module attributes {stable_mosaic.version = 11 : i64} {
  func.func @encoder_kernel(%arg0: memref<8x32xf32, #tpu.memory_space<vmem>>, %arg1: memref<32x16xf32, #tpu.memory_space<vmem>>, %arg2: memref<2x16xf32, #tpu.memory_space<vmem>>, %arg3: memref<8x16xf32, #tpu.memory_space<vmem>>) attributes {dimension_semantics = [], scalar_prefetch = 0 : i64, scratch_operands = 0 : i64, tpu.core_type = #tpu.core_type<tc>} {
    %c0 = arith.constant 0 : index
    %c0_0 = arith.constant 0 : index
    %0 = vector.load %arg0[%c0, %c0_0] : memref<8x32xf32, #tpu.memory_space<vmem>>, vector<8x32xf32>
    %c0_1 = arith.constant 0 : index
    %c0_2 = arith.constant 0 : index
    %1 = vector.load %arg1[%c0_1, %c0_2] : memref<32x16xf32, #tpu.memory_space<vmem>>, vector<32x16xf32>
    %cst = arith.constant dense<0.000000e+00> : vector<8x16xf32>
    %2 = tpu.matmul %0, %1, %cst {dimension_numbers = #tpu.dot_dimension_numbers<[1], [0], [0], [1], [0, 0, 1, 1], [], []>} : vector<8x32xf32>, vector<32x16xf32>, vector<8x16xf32> -> vector<8x16xf32>
    %cst_3 = arith.constant dense<0.000000e+00> : vector<16xf32>
    %3 = vector.multi_reduction <add>, %2, %cst_3 [0] : vector<8x16xf32> to vector<16xf32>
    %4 = vector.shape_cast %3 : vector<16xf32> to vector<1x16xf32>
    %cst_4 = arith.constant 8.000000e+00 : f32
    %5 = vector.broadcast %cst_4 : f32 to vector<1x16xf32>
    %6 = arith.divf %4, %5 : vector<1x16xf32>
    %7 = vector.broadcast %6 : vector<1x16xf32> to vector<8x16xf32>
    %8 = arith.subf %2, %7 : vector<8x16xf32>
    %9 = arith.mulf %8, %8 : vector<8x16xf32>
    %cst_5 = arith.constant dense<0.000000e+00> : vector<16xf32>
    %10 = vector.multi_reduction <add>, %9, %cst_5 [0] : vector<8x16xf32> to vector<16xf32>
    %11 = vector.shape_cast %10 : vector<16xf32> to vector<1x16xf32>
    %cst_6 = arith.constant 8.000000e+00 : f32
    %12 = vector.broadcast %cst_6 : f32 to vector<1x16xf32>
    %13 = arith.divf %11, %12 : vector<1x16xf32>
    %c0_7 = arith.constant 0 : index
    %c0_8 = arith.constant 0 : index
    %14 = vector.load %arg2[%c0_7, %c0_8] : memref<2x16xf32, #tpu.memory_space<vmem>>, vector<1x16xf32>
    %c1 = arith.constant 1 : index
    %c0_9 = arith.constant 0 : index
    %15 = vector.load %arg2[%c1, %c0_9] : memref<2x16xf32, #tpu.memory_space<vmem>>, vector<1x16xf32>
    %cst_10 = arith.constant 9.99999974E-6 : f32
    %16 = vector.broadcast %cst_10 : f32 to vector<1x16xf32>
    %17 = arith.addf %13, %16 : vector<1x16xf32>
    %18 = math.rsqrt %17 : vector<1x16xf32>
    %19 = vector.broadcast %18 : vector<1x16xf32> to vector<8x16xf32>
    %20 = arith.mulf %8, %19 : vector<8x16xf32>
    %21 = vector.broadcast %14 : vector<1x16xf32> to vector<8x16xf32>
    %22 = arith.mulf %20, %21 : vector<8x16xf32>
    %23 = vector.broadcast %15 : vector<1x16xf32> to vector<8x16xf32>
    %24 = arith.addf %22, %23 : vector<8x16xf32>
    %cst_11 = arith.constant 0.000000e+00 : f32
    %25 = vector.broadcast %cst_11 : f32 to vector<8x16xf32>
    %26 = arith.maximumf %24, %25 : vector<8x16xf32>
    %c0_12 = arith.constant 0 : index
    %c0_13 = arith.constant 0 : index
    %27 = vector.load %arg3[%c0_12, %c0_13] : memref<8x16xf32, #tpu.memory_space<vmem>>, vector<8x16xf32>
    tpu.vector_store %arg3[%c0_12, %c0_13], %26 {strides = array<i32>} : memref<8x16xf32, #tpu.memory_space<vmem>>, vector<8x16xf32>,
    return
  }
}

</mosaic_0001>

<bundles_post_ra>
// kernel: tpu_custom_call.1
= control target key start
LH: loop header
LB: loop body
LE: loop exit
PB: predicated region body
PF: predicated region fallthrough
CT: control target
= control target key end

     0   :  { %s190_s0 = inlined_call_operand.vmem [shape: f32[8,32], index: 0, kind: input, shape index: {}]   ;;  %s191_s1 = inlined_call_operand.vmem [shape: f32[32,16], index: 1, kind: input, shape index: {}]   ;;  %s192_s2 = inlined_call_operand.vmem [shape: f32[2,16], index: 2, kind: input, shape index: {}]   ;;  %s193_s3 = inlined_call_operand.hbm [shape: f32[8,16], index: 3, kind: output, shape index: {}]  }
   0x1   :  { %v19_v0 = vld [vmem:[%s191_s1 + $0x18] sm:$0xff]  ;;  %v18_v1 = vld [vmem:[%s191_s1 + $0x10] sm:$0xff]  ;;  %v17_v2 = vld [vmem:[%s191_s1 + $0x8] sm:$0xff] }
   0x2   :  { %36 = vmatpush.msra.mxu0 %v19_v0 }
   0x3   :  { %8 = vsyncpa [#allocation3], 0  ;;  %v16_v3 = vld [vmem:[%s191_s1] sm:$0xff]  ;;  %vm20_vm0 = vcmask 261120   ;;  %v141_v5 = vmov 8.0   ;;  %vm44_vm1 = vcmask 130048  }
   0x4   :  { %37 = vmatpush.msra.mxu0 %v18_v1  ;;  %v15_v4 = vld [vmem:[%s190_s0] sm:$0xff]  ;;  %111 = vrcp.f32 %v141_v5  ;;  %s142_s24 = smov [#allocation2]   ;;  %s97_s28 = sshll.u32 %s193_s3, 4  ;;  %s98_s28 = int_to_ptr.hbm [resolvable:$true] %s97_s28 }
   0x5   :  { %v109_v38 = vld [vmem:[%s192_s2] ss:$0 sm:$0xff]  ;;  %v110_v41 = vld [vmem:[%s192_s2 + $0x1] ss:$0 sm:$0xff]  ;;  %s95_s25 = sshll.u32 %s142_s24, 4  ;;  %s96_s25 = int_to_ptr.vmem [resolvable:$true] %s95_s25 }
   0x6   :  { %38 = vmatpush.msra.mxu0 %v17_v2 }
   0x8   :  { %39 = vmatpush.msra.mxu0 %v16_v3 }
   0x9   :  { %106 = vmatmul.msk.f32.vlgmr.msra.gmra.mxu0 %vm20_vm0, %v15_v4 }
   0xa   :  { %v112_v6 = vpop.eup %111 }
   0xb   :  { %v53_v7 = vmul.f32 8.0, %v112_v6  ;;  %vm57_vm2 = vweird.f32 %v112_v6 }
   0xd   :  { %v54_v8 = vsub.f32 1.0, %v53_v7 }
   0xf   :  { %v55_v12 = vmul.f32 %v112_v6, %v54_v8 }
  0x11   :  { %v56_v15 = vadd.f32 %v112_v6, %v55_v12 }
  0x13   :  { %v58_v18 = vsel %vm57_vm2, %v112_v6, %v56_v15 }
  0x86   :  { %v41_v9 = vpop.f32.mrf.mxu0 }
  0x87   :  { %v45_v10 = vsel %vm44_vm1, %v41_v9, 0.0 }
  0x88   :  { %v46_v11 = vrot.slane %v45_v10, 4 }
  0x8a   :  { %v47_v13 = vadd.f32 %v46_v11, %v45_v10 }
  0x8c   :  { %v48_v14 = vrot.slane %v47_v13, 2 }
  0x8e   :  { %v49_v16 = vadd.f32 %v48_v14, %v47_v13 }
  0x90   :  { %v50_v17 = vrot.slane %v49_v16, 1 }
  0x92   :  { %v51_v19 = vadd.f32 %v50_v17, %v49_v16 }
  0x94   :  { %v59_v20 = vmul.f32 %v58_v18, %v51_v19 }
  0x96   :  { %v60_v21 = vsub.f32 %v41_v9, %v59_v20 }
  0x98   :  { %v61_v22 = vmul.f32 %v60_v21, %v60_v21 }
  0x9a   :  { %v62_v23 = vsel %vm44_vm1, %v61_v22, 0.0 }
  0x9b   :  { %v63_v24 = vrot.slane %v62_v23, 4 }
  0x9d   :  { %v64_v25 = vadd.f32 %v63_v24, %v62_v23 }
  0x9f   :  { %v65_v26 = vrot.slane %v64_v25, 2 }
  0xa1   :  { %v66_v27 = vadd.f32 %v65_v26, %v64_v25 }
  0xa3   :  { %v67_v28 = vrot.slane %v66_v27, 1 }
  0xa5   :  { %v68_v29 = vadd.f32 %v67_v28, %v66_v27 }
  0xa7   :  { %v69_v30 = vmul.f32 %v68_v29, %v58_v18 }
  0xa9   :  { %v72_v31 = vadd.f32 1e-05, %v69_v30 }
  0xab   :  { %113 = vrsqrt.f32 %v72_v31  ;;  %vm79_vm4 = vweird.f32 %v72_v31 }
  0xb1   :  { %v114_v32 = vpop.eup %113 }
  0xb2   :  { %v74_v33 = vmul.f32 %v114_v32, %v72_v31  ;;  %vm80_vm3 = vweird.f32 %v114_v32 }
  0xb3   :  { %vm81_vm5 = vmor %vm79_vm4, %vm80_vm3 }
  0xb4   :  { %v75_v34 = vmul.f32 %v114_v32, %v74_v33 }
  0xb6   :  { %v76_v35 = vmul.f32 0.5, %v75_v34 }
  0xb8   :  { %v77_v36 = vsub.f32 1.5, %v76_v35 }
  0xba   :  { %v78_v37 = vmul.f32 %v114_v32, %v77_v36 }
  0xbc   :  { %v82_v39 = vsel %vm81_vm5, %v114_v32, %v78_v37 }
  0xbd   :  { %v83_v40 = vmul.f32 %v82_v39, %v60_v21 }
  0xbf   :  { %v85_v42 = vmul.f32 %v109_v38, %v83_v40 }
  0xc1   :  { %v87_v43 = vadd.f32 %v110_v41, %v85_v42 }
  0xc3   :  { %v88_v44 = vmax.f32 %v87_v43, 0.0 }
  0xc5   :  { %89 = vst.msk [vmem:[#allocation2] sm:$0xff] %vm44_vm1, %v88_v44 }
  0xc6   :  { %100 = dma.vmem_to_hbm [thread:$0]  %s96_s25, 128, %s98_s28, [#allocation3]  }
  0xc7   :  { %139 = dma.done.wait [#allocation3], 128  }
  0xc8   :  { %140 = vsyncadd [#allocation3], 4294967168 }
  0xc9   :  { %105 = vsyncpa [#allocation3], 1 }

</bundles_post_ra>
